<compile_context>
chip_gen: v7x
topology: tpu7x:2x2x1
jax: 0.10.0
libtpu: 0.0.40
codegen_flags: <defaults>
</compile_context>

<pallas_src>
import functools

import jax
import jax.numpy as jnp
from jax.experimental import pallas as pl
from jax.experimental.pallas import tpu as pltpu

LANE, SUBLANE = 128, 8


def _round_up(x, m):
    return ((x + m - 1) // m) * m


def _device_kind():
    try:
        return jax.devices()[0].device_kind.lower()
    except Exception:
        return ""


def default_compute_dtype():
    """bf16 matmul inputs on bf16-native-MXU generations (v6e/v7x), f32 otherwise."""
    kind = _device_kind()
    if "v6" in kind or "v7" in kind or "7x" in kind:
        return jnp.bfloat16
    return jnp.float32


def _num_tensorcores():
    """v7x has 2 TensorCores per chip; earlier targeted gens have 1."""
    kind = _device_kind()
    return 2 if ("v7" in kind or "7x" in kind) else 1


# ----------------------------------------------------------------------------
# Kernel body: out = relu(x @ w1 + b1) @ w2 + b2     (f32 accumulation)
# ----------------------------------------------------------------------------
def qvaluenet_kernel(x_ref, w1_ref, b1_ref, w2_ref, b2_ref, o_ref):
    # fc1: [bm, S] @ [S, H] -> f32 accumulate on the MXU.
    h = jnp.dot(x_ref[...], w1_ref[...], preferred_element_type=jnp.float32)
    # bias + relu in f32 on the VPU (no bf16 elementwise -> v5e safe).
    h = jnp.maximum(h + b1_ref[...], 0.0)
    # fc2: [bm, H] @ [H, A_pad]; cast LHS to the weight dtype so bf16 weights
    # get a real bf16 MXU pass; accumulation stays f32.
    out = jnp.dot(h.astype(w2_ref.dtype), w2_ref[...],
                  preferred_element_type=jnp.float32)
    o_ref[...] = (out + b2_ref[...]).astype(o_ref.dtype)


# ----------------------------------------------------------------------------
# One-time parameter packing (done at init, NOT on the hot path).
# ----------------------------------------------------------------------------
def pack_params(w1, b1, w2, b2, compute_dtype=None):
    """Pad action_dim -> 128 lanes, reshape biases to (1,N), cast matmul weights."""
    if compute_dtype is None:
        compute_dtype = default_compute_dtype()
    compute_dtype = jnp.dtype(compute_dtype)
    H = w1.shape[1]
    A = w2.shape[1]
    A_pad = _round_up(max(A, LANE), LANE)
    return dict(
        w1=w1.astype(compute_dtype),
        b1=b1.reshape(1, H).astype(jnp.float32),
        w2=jnp.pad(w2, ((0, 0), (0, A_pad - A))).astype(compute_dtype),
        b2=jnp.pad(b2, (0, A_pad - A)).reshape(1, A_pad).astype(jnp.float32),
        A=A,
        A_pad=A_pad,
    )


# ----------------------------------------------------------------------------
# Forward implementation (jitted; shapes/ints are static per trace).
# ----------------------------------------------------------------------------
@functools.partial(jax.jit,
                   static_argnames=("A", "A_pad", "bm_max", "n_cores"))
def _forward_impl(x, w1, b1p, w2p, b2p, *, A, A_pad, bm_max, n_cores):
    B, S = x.shape
    H = w1.shape[1]
    compute_dtype = w1.dtype
    x_in = x if x.dtype == compute_dtype else x.astype(compute_dtype)

    itemsize = jnp.dtype(compute_dtype).itemsize
    # bf16 packs 2 rows per sublane -> keep batch tiles 16-row aligned.
    row_align = SUBLANE if itemsize >= 4 else SUBLANE * (4 // itemsize)
    bm_cap = max(row_align, (bm_max // row_align) * row_align)

    if n_cores > 1 and B >= 2 * row_align:
        # v7x: keep >= 2 parallel batch tiles so both TensorCores get work.
        target = _round_up(pl.cdiv(B, n_cores), row_align)
    else:
        target = _round_up(max(B, 1), row_align)
    bm = min(bm_cap, target)
    num_tiles = pl.cdiv(B, bm)

    cost = pl.CostEstimate(
        flops=2 * B * S * H + 2 * B * H * A_pad,  # A_pad counted: real MXU work
        transcendentals=0,
        bytes_accessed=int(B * S * itemsize + S * H * itemsize + H * 4
                           + H * A_pad * itemsize + A_pad * 4 + B * A_pad * 4),
    )
    out_shape = jax.ShapeDtypeStruct((B, A_pad), jnp.float32)

    if num_tiles == 1:
        # Single-shot: no grid machinery, whole arrays in VMEM (KiB-scale here).
        out = pl.pallas_call(
            qvaluenet_kernel,
            out_shape=out_shape,
            cost_estimate=cost,
        )(x_in, w1, b1p, w2p, b2p)
    else:
        # Batch-tiled grid; weights/biases stay VMEM-resident (index_map -> (0,0)).
        # Trailing partial tile handled by Pallas block clamping (rows independent).
        out = pl.pallas_call(
            qvaluenet_kernel,
            out_shape=out_shape,
            grid=(num_tiles,),
            in_specs=[
                pl.BlockSpec((bm, S), lambda i: (i, 0)),
                pl.BlockSpec((S, H), lambda i: (0, 0)),
                pl.BlockSpec((1, H), lambda i: (0, 0)),
                pl.BlockSpec((H, A_pad), lambda i: (0, 0)),
                pl.BlockSpec((1, A_pad), lambda i: (0, 0)),
            ],
            out_specs=pl.BlockSpec((bm, A_pad), lambda i: (i, 0)),
            compiler_params=pltpu.CompilerParams(
                dimension_semantics=("parallel",)),
            cost_estimate=cost,
        )(x_in, w1, b1p, w2p, b2p)

    # Drop the zero-padded action columns (lane-dense output trick).
    return out[:, :A]


def make_qvaluenet_forward(params, *, bm_max=2048):
    """Returns a jitted forward fn x:[B, state_dim] f32 -> [B, action_dim] f32."""
    w1, b1p, w2p, b2p = params["w1"], params["b1"], params["w2"], params["b2"]
    A, A_pad = params["A"], params["A_pad"]
    n_cores = _num_tensorcores()

    def fwd(x):
        return _forward_impl(x, w1, b1p, w2p, b2p, A=A, A_pad=A_pad,
                             bm_max=bm_max, n_cores=n_cores)

    return fwd


def init_params(key, state_dim, hidden_dim, action_dim):
    """Deterministic init mimicking torch.nn.Linear default U[-1/sqrt(fan_in), 1/sqrt(fan_in)]."""
    k1, k2, k3, k4 = jax.random.split(key, 4)
    bound1 = 1.0 / jnp.sqrt(state_dim)
    bound2 = 1.0 / jnp.sqrt(hidden_dim)
    # Stored as [in, out] (transpose of torch's [out, in]) for the x @ W layout.
    w1 = jax.random.uniform(k1, (state_dim, hidden_dim), jnp.float32, -bound1, bound1)
    b1 = jax.random.uniform(k2, (hidden_dim,), jnp.float32, -bound1, bound1)
    w2 = jax.random.uniform(k3, (hidden_dim, action_dim), jnp.float32, -bound2, bound2)
    b2 = jax.random.uniform(k4, (action_dim,), jnp.float32, -bound2, bound2)
    return w1, b1, w2, b2


if __name__ == "__main__":
    # CartPole-v1: state_dim=4, action_dim=2; hidden_dim=128 as in the module.
    state_dim, hidden_dim, action_dim = 4, 128, 2

    key = jax.random.PRNGKey(0)
    kx, kp = jax.random.split(key)
    w1, b1, w2, b2 = init_params(kp, state_dim, hidden_dim, action_dim)

    def ref_fn(xs):
        return jnp.maximum(xs @ w1 + b1, 0.0) @ w2 + b2

    # --- f32 params (tight tolerance), default bm_max (few / single tiles) ---
    params_f32 = pack_params(w1, b1, w2, b2, compute_dtype=jnp.float32)
    fwd_f32 = make_qvaluenet_forward(params_f32)

    # 1) Tiny CartPole-sized batch -> single-block (grid-less) path.
    x_small = jax.random.normal(kx, (2, state_dim), jnp.float32)
    out_small = jax.block_until_ready(fwd_f32(x_small))
    assert out_small.shape == (2, action_dim)
    assert jnp.allclose(out_small, ref_fn(x_small), atol=1e-5, rtol=1e-5)

    # 2) Larger batch, no per-call batch padding of x.
    x_big = jax.random.normal(kx, (500, state_dim), jnp.float32)
    out_big = jax.block_until_ready(fwd_f32(x_big))
    assert out_big.shape == (500, action_dim)
    assert jnp.allclose(out_big, ref_fn(x_big), atol=1e-4, rtol=1e-4)

    # 3) Forced multi-tile grid path with a ragged trailing tile (500 = 3*128 + 116)
    #    to exercise Pallas block clamping on every generation.
    fwd_tiled = make_qvaluenet_forward(params_f32, bm_max=128)
    out_tiled = jax.block_until_ready(fwd_tiled(x_big))
    assert out_tiled.shape == (500, action_dim)
    assert jnp.allclose(out_tiled, ref_fn(x_big), atol=1e-4, rtol=1e-4)

    # 4) Auto compute dtype: bf16 matmul inputs on v6e/v7x, f32 elsewhere.
    params_auto = pack_params(w1, b1, w2, b2)
    fwd_auto = make_qvaluenet_forward(params_auto)
    out_auto = jax.block_until_ready(fwd_auto(x_big))
    assert out_auto.shape == (500, action_dim)
    if params_auto["w1"].dtype == jnp.float32:
        assert jnp.allclose(out_auto, ref_fn(x_big), atol=1e-4, rtol=1e-4)
    else:
        assert jnp.allclose(out_auto, ref_fn(x_big), atol=1e-1, rtol=1e-1)

    print("KERNEL_OK")
</pallas_src>

<mosaic_0001>
module attributes {stable_mosaic.version = 11 : i64} {
  func.func @qvaluenet_kernel(%arg0: memref<2x4xf32, #tpu.memory_space<vmem>>, %arg1: memref<4x128xf32, #tpu.memory_space<vmem>>, %arg2: memref<1x128xf32, #tpu.memory_space<vmem>>, %arg3: memref<128x128xf32, #tpu.memory_space<vmem>>, %arg4: memref<1x128xf32, #tpu.memory_space<vmem>>, %arg5: memref<2x128xf32, #tpu.memory_space<vmem>>) attributes {dimension_semantics = [], scalar_prefetch = 0 : i64, scratch_operands = 0 : i64, tpu.core_type = #tpu.core_type<tc>} {
    %c0 = arith.constant 0 : index
    %c0_0 = arith.constant 0 : index
    %0 = vector.load %arg0[%c0, %c0_0] : memref<2x4xf32, #tpu.memory_space<vmem>>, vector<2x4xf32>
    %c0_1 = arith.constant 0 : index
    %c0_2 = arith.constant 0 : index
    %1 = vector.load %arg1[%c0_1, %c0_2] : memref<4x128xf32, #tpu.memory_space<vmem>>, vector<4x128xf32>
    %cst = arith.constant dense<0.000000e+00> : vector<2x128xf32>
    %2 = tpu.matmul %0, %1, %cst {dimension_numbers = #tpu.dot_dimension_numbers<[1], [0], [0], [1], [0, 0, 1, 1], [], []>} : vector<2x4xf32>, vector<4x128xf32>, vector<2x128xf32> -> vector<2x128xf32>
    %c0_3 = arith.constant 0 : index
    %c0_4 = arith.constant 0 : index
    %3 = vector.load %arg2[%c0_3, %c0_4] : memref<1x128xf32, #tpu.memory_space<vmem>>, vector<1x128xf32>
    %4 = vector.broadcast %3 : vector<1x128xf32> to vector<2x128xf32>
    %5 = arith.addf %2, %4 : vector<2x128xf32>
    %cst_5 = arith.constant 0.000000e+00 : f32
    %6 = vector.broadcast %cst_5 : f32 to vector<2x128xf32>
    %7 = arith.maximumf %5, %6 : vector<2x128xf32>
    %c0_6 = arith.constant 0 : index
    %c0_7 = arith.constant 0 : index
    %8 = vector.load %arg3[%c0_6, %c0_7] : memref<128x128xf32, #tpu.memory_space<vmem>>, vector<128x128xf32>
    %cst_8 = arith.constant dense<0.000000e+00> : vector<2x128xf32>
    %9 = tpu.matmul %7, %8, %cst_8 {dimension_numbers = #tpu.dot_dimension_numbers<[1], [0], [0], [1], [0, 0, 1, 1], [], []>} : vector<2x128xf32>, vector<128x128xf32>, vector<2x128xf32> -> vector<2x128xf32>
    %c0_9 = arith.constant 0 : index
    %c0_10 = arith.constant 0 : index
    %10 = vector.load %arg4[%c0_9, %c0_10] : memref<1x128xf32, #tpu.memory_space<vmem>>, vector<1x128xf32>
    %11 = vector.broadcast %10 : vector<1x128xf32> to vector<2x128xf32>
    %12 = arith.addf %9, %11 : vector<2x128xf32>
    %c0_11 = arith.constant 0 : index
    %c0_12 = arith.constant 0 : index
    %13 = vector.load %arg5[%c0_11, %c0_12] : memref<2x128xf32, #tpu.memory_space<vmem>>, vector<2x128xf32>
    tpu.vector_store %arg5[%c0_11, %c0_12], %12 {strides = array<i32>} : memref<2x128xf32, #tpu.memory_space<vmem>>, vector<2x128xf32>,
    return
  }
}

</mosaic_0001>

<bundles_post_ra>
// kernel: _forward_impl.1
= control target key start
LH: loop header
LB: loop body
LE: loop exit
PB: predicated region body
PF: predicated region fallthrough
CT: control target
= control target key end

     0   :  { %10 = vsyncpa [#allocation3], 0  ;;  %s539_s0 = inlined_call_operand.hbm [shape: f32[2,4], index: 0, kind: input, shape index: {}]   ;;  %s540_s1 = inlined_call_operand.hbm [shape: f32[4,128], index: 1, kind: input, shape index: {}]   ;;  %s541_s2 = inlined_call_operand.vmem [shape: f32[1,128], index: 2, kind: input, shape index: {}]   ;;  %s542_s3 = inlined_call_operand.hbm [shape: f32[128,128], index: 3, kind: input, shape index: {}]   ;;  %s543_s4 = inlined_call_operand.vmem [shape: f32[1,128], index: 4, kind: input, shape index: {}]   ;;  %s544_s5 = inlined_call_operand.hbm [shape: f32[2,128], index: 5, kind: output, shape index: {}]  }
   0x1   :  { %11 = vsyncpa [#allocation6], 0 }
   0x2   :  { %12 = vsyncpa [#allocation4], 0  ;;  %s446_s18 = smov [#allocation5]   ;;  %s447_s20 = smov [#allocation2]  }
   0x3   :  { %s29_s19 = sshll.u32 %s446_s18, 4  ;;  %s19_s21 = sshll.u32 %s447_s20, 4  ;;  %s30_s19 = int_to_ptr.vmem [resolvable:$true] %s29_s19  ;;  %s20_s21 = int_to_ptr.vmem [resolvable:$true] %s19_s21 }
   0x4   :  { %s352_s24 = scalar_lea.hbm %s540_s1, 64 }
   0x5   :  { %p353_p0 = scmp.ne.s32.totalorder %s540_s1, %s352_s24  ;;  %p356_p1 = scmp.lt.u32.totalorder %s352_s24, %s540_s1 }
   0x7   :  { %p358_p2 = pnand %p356_p1, %p353_p0 }
   0x9   :  { %361 = shalt.err (!%p358_p2)
}
   0xa   :  { %s362_s29 = scalar_lea.vmem %s30_s19, 64  ;;  %p367_p4 = scmp.lt.s32.totalorder %s30_s19, %s30_s19 }
   0xb   :  { %p363_p3 = scmp.ne.s32.totalorder %s30_s19, %s362_s29  ;;  %p368_p5 = scmp.lt.s32.totalorder %s362_s29, %s362_s29 }
   0xd   :  { %p369_p6 = por %p368_p5, %p367_p4 }
   0xf   :  { %p370_p7 = pnand %p369_p6, %p363_p3 }
  0x11   :  { %373 = shalt.err (!%p370_p7)
}
  0x12   :  { %32 = dma.hbm_to_vmem [thread:$0]  %s540_s1, 64, %s30_s19, [#allocation6]  }
  0x13   :  { %s374_s9 = scalar_lea.hbm %s539_s0, 32 }
  0x14   :  { %p375_p8 = scmp.ne.s32.totalorder %s539_s0, %s374_s9  ;;  %p378_p9 = scmp.lt.u32.totalorder %s374_s9, %s539_s0 }
  0x16   :  { %p380_p10 = pnand %p378_p9, %p375_p8 }
  0x18   :  { %383 = shalt.err (!%p380_p10)
}
  0x19   :  { %s384_s14 = scalar_lea.vmem %s20_s21, 32  ;;  %p389_p12 = scmp.lt.s32.totalorder %s20_s21, %s20_s21 }
  0x1a   :  { %p385_p11 = scmp.ne.s32.totalorder %s20_s21, %s384_s14  ;;  %p390_p13 = scmp.lt.s32.totalorder %s384_s14, %s384_s14 }
  0x1c   :  { %p391_p0 = por %p390_p13, %p389_p12 }
  0x1e   :  { %p392_p1 = pnand %p391_p0, %p385_p11 }
  0x20   :  { %395 = shalt.err (!%p392_p1)
}
  0x21   :  { %22 = dma.hbm_to_vmem [thread:$0]  %s539_s0, 32, %s20_s21, [#allocation3]  }
  0x22   :  { %s448_s16 = smov [#allocation7]   ;;  %s396_s20 = scalar_lea.hbm %s542_s3, 2048 }
  0x23   :  { %s40_s17 = sshll.u32 %s448_s16, 4  ;;  %p397_p2 = scmp.ne.s32.totalorder %s542_s3, %s396_s20  ;;  %s41_s17 = int_to_ptr.vmem [resolvable:$true] %s40_s17 }
  0x24   :  { %p400_p3 = scmp.lt.u32.totalorder %s396_s20, %s542_s3 }
  0x26   :  { %p402_p4 = pnand %p400_p3, %p397_p2 }
  0x28   :  { %405 = shalt.err (!%p402_p4)
}
  0x29   :  { %s406_s26 = scalar_lea.vmem %s41_s17, 2048  ;;  %p411_p6 = scmp.lt.s32.totalorder %s41_s17, %s41_s17 }
  0x2a   :  { %p407_p5 = scmp.ne.s32.totalorder %s41_s17, %s406_s26  ;;  %p412_p7 = scmp.lt.s32.totalorder %s406_s26, %s406_s26 }
  0x2c   :  { %p413_p8 = por %p412_p7, %p411_p6 }
  0x2e   :  { %p414_p9 = pnand %p413_p8, %p407_p5 }
  0x30   :  { %417 = shalt.err (!%p414_p9)
}
  0x31   :  { %s449_s0 = smov 128   ;;  %s450_s21 = smov 8  }
  0x32   :  { %46 = dma.hbm_to_vmem [thread:$0]  %s542_s3, 2048, %s41_s17, [#allocation6], %s449_s0, %s449_s0, %s450_s21  }
  0x33   :  { %440 = dma.done.wait [#allocation3], 32  }
  0x34   :  { %441 = vsyncadd [#allocation3], 4294967264 }
  0x35   :  { %442 = dma.done.wait [#allocation6], 2112  }
  0x36   :  { %443 = vsyncadd [#allocation6], 4294965184  ;;  %v451_v0 = vmov 0.0   ;;  %vm452_vm0 = vmmov 0   ;;  %v453_v1 = vmov 0.0|0.0   ;;  %vm71_vm1 = vcmask 1043456  }
  0x37   :  { %279 = vmatprep.subr.mxu0 %v451_v0  ;;  %281 = vmatprep.mubr.msk.f32.mxu0 %vm452_vm0, %v451_v0  ;;  %vm67_vm2 = vcmask 31744   ;;  %v59_v2 = vld [vmem:[#allocation5] sm:$0xf]  ;;  %v58_v3 = vld [vmem:[#allocation2] sm:$0x3]  ;;  %v146_v4 = vld [vmem:[#allocation7] sm:$0xff] }
  0x38   :  { %319 = vmatprep.subr.bf16.mxu1 %v453_v1  ;;  %316 = vmatprep.mubr.msk.f32.mxu1 %vm452_vm0, %v451_v0  ;;  %v147_v5 = vld [vmem:[#allocation7 + $0x8] sm:$0xff]  ;;  %v148_v6 = vld [vmem:[#allocation7 + $0x10] sm:$0xff]  ;;  %v149_v7 = vld [vmem:[#allocation7 + $0x18] sm:$0xff]  ;;  %s454_s7 = smov [#allocation8]  }
  0x39   :  { %280 = vmatpush3.msk.msra.mxu0 %vm71_vm1, %v59_v2  ;;  %v320_v8 = vpack.c.bf16 %v147_v5, %v146_v4  ;;  %v323_v9 = vpack.c.bf16 %v149_v7, %v148_v6  ;;  %v150_v10 = vld [vmem:[#allocation7 + $0x20] sm:$0xff]  ;;  %v151_v11 = vld [vmem:[#allocation7 + $0x28] sm:$0xff]  ;;  %v152_v13 = vld [vmem:[#allocation7 + $0x30] sm:$0xff]  ;;  %s246_s8 = sshll.u32 %s454_s7, 4  ;;  %s247_s8 = int_to_ptr.vmem [resolvable:$true] %s246_s8 }
  0x3a   :  { %282 = vmatmul.mubr.msk.f32.vlgmr.msra.gmra.mrb[0].mxu0 %vm67_vm2, %v58_v3  ;;  %v326_v12 = vpack.c.bf16 %v151_v11, %v150_v10  ;;  %v153_v14 = vld [vmem:[#allocation7 + $0x38] sm:$0xff]  ;;  %v154_v16 = vld [vmem:[#allocation7 + $0x40] sm:$0xff]  ;;  %v155_v17 = vld [vmem:[#allocation7 + $0x48] sm:$0xff]  ;;  %s418_s9 = scalar_lea.vmem %s247_s8, 32  ;;  %p423_p11 = scmp.lt.s32.totalorder %s247_s8, %s247_s8 }
  0x3b   :  { %321 = vmatpush3.bf16.msra.mxu1 %v320_v8  ;;  %v329_v15 = vpack.c.bf16 %v153_v14, %v152_v13  ;;  %v332_v18 = vpack.c.bf16 %v155_v17, %v154_v16  ;;  %v156_v19 = vld [vmem:[#allocation7 + $0x50] sm:$0xff]  ;;  %v157_v20 = vld [vmem:[#allocation7 + $0x58] sm:$0xff]  ;;  %v158_v22 = vld [vmem:[#allocation7 + $0x60] sm:$0xff]  ;;  %p419_p10 = scmp.ne.s32.totalorder %s247_s8, %s418_s9  ;;  %p424_p12 = scmp.lt.s32.totalorder %s418_s9, %s418_s9 }
  0x3c   :  { %322 = vmatprep.subr.bf16.mxu1 %v453_v1  ;;  %v335_v21 = vpack.c.bf16 %v157_v20, %v156_v19  ;;  %v159_v23 = vld [vmem:[#allocation7 + $0x68] sm:$0xff]  ;;  %v160_v25 = vld [vmem:[#allocation7 + $0x70] sm:$0xff]  ;;  %v161_v26 = vld [vmem:[#allocation7 + $0x78] sm:$0xff] }
  0x3d   :  { %v338_v24 = vpack.c.bf16 %v159_v23, %v158_v22  ;;  %v341_v27 = vpack.c.bf16 %v161_v26, %v160_v25  ;;  %v256_v28 = vld [vmem:[%s541_s2] ss:$0 sm:$0xff]  ;;  %p425_p13 = por %p424_p12, %p423_p11 }
  0x3e   :  { %v259_v33 = vld [vmem:[%s543_s4] ss:$0 sm:$0xff] }
  0x3f   :  { %324 = vmatpush3.bf16.msra.mxu1 %v323_v9  ;;  %p426_p0 = pnand %p425_p13, %p419_p10 }
  0x40   :  { %325 = vmatprep.subr.bf16.mxu1 %v453_v1 }
  0x43   :  { %327 = vmatpush3.bf16.msra.mxu1 %v326_v12 }
  0x44   :  { %328 = vmatprep.subr.bf16.mxu1 %v453_v1 }
  0x47   :  { %330 = vmatpush3.bf16.msra.mxu1 %v329_v15 }
  0x48   :  { %331 = vmatprep.subr.bf16.mxu1 %v453_v1 }
  0x4b   :  { %333 = vmatpush3.bf16.msra.mxu1 %v332_v18 }
  0x4c   :  { %334 = vmatprep.subr.bf16.mxu1 %v453_v1 }
  0x4f   :  { %336 = vmatpush3.bf16.msra.mxu1 %v335_v21 }
  0x50   :  { %337 = vmatprep.subr.bf16.mxu1 %v453_v1 }
  0x53   :  { %339 = vmatpush3.bf16.msra.mxu1 %v338_v24 }
  0x54   :  { %340 = vmatprep.subr.bf16.mxu1 %v453_v1 }
  0x57   :  { %342 = vmatpush3.bf16.msra.mxu1 %v341_v27 }
 0x10d   :  { %v141_v29 = vpop.f32.mrb[0].mxu0 }
 0x10e   :  { %v142_v30 = vadd.f32 %v256_v28, %v141_v29  ;;  %v283_v31 = vpop.f32.mrb[1].mxu0 }
 0x110   :  { %v145_v32 = vmax.f32 %v142_v30, 0.0 }
 0x112   :  { %317 = vmatmul.mubr.f32.vlgmr.msra.gmra.mrb[0].mxu1 %v145_v32 }
 0x1e5   :  { %v235_v34 = vpop.f32.mrb[0].mxu1 }
 0x1e6   :  { %v236_v35 = vadd.f32 %v259_v33, %v235_v34  ;;  %v318_v36 = vpop.f32.mrb[1].mxu1 }
 0x1e8   :  { %239 = vst [vmem:[#allocation8] sm:$0x3] %v236_v35 }
 0x1e9   :  { %429 = shalt.err (!%p426_p0)
}
 0x1ea   :  { %s430_s11 = scalar_lea.hbm %s544_s5, 32 }
 0x1eb   :  { %p431_p1 = scmp.ne.s32.totalorder %s544_s5, %s430_s11  ;;  %p434_p2 = scmp.lt.u32.totalorder %s430_s11, %s544_s5 }
 0x1ed   :  { %p436_p3 = pnand %p434_p2, %p431_p1 }
 0x1ef   :  { %439 = shalt.err (!%p436_p3)
}
 0x1f0   :  { %249 = dma.vmem_to_hbm [thread:$0]  %s247_s8, 32, %s544_s5, [#allocation4]  }
 0x1f1   :  { %444 = dma.done.wait [#allocation4], 32  }
 0x1f2   :  { %445 = vsyncadd [#allocation4], 4294967264 }
 0x1f3   :  { %253 = vsyncpa [#allocation3], 1 }
 0x1f4   :  { %254 = vsyncpa [#allocation6], 1 }
 0x1f5   :  { %255 = vsyncpa [#allocation4], 1 }

</bundles_post_ra>
